<compile_context>
chip_gen: v6e
topology: v6e:2x2x1
jax: 0.10.0
libtpu: 0.0.40
codegen_flags: <defaults>
</compile_context>

<pallas_src>
import functools

import jax
import jax.numpy as jnp
from jax.experimental import pallas as pl
from jax.experimental.pallas import tpu as pltpu

LANE = 128      # vreg lane width  (last-dim tiling quantum)
SUBLANE = 8     # vreg sublane width (second-last-dim tiling quantum)


# ----------------------------- Pallas kernel --------------------------------
def fused_gcn_kernel(a1_ref, x_ref, dn1_ref, w1_ref, b1_ref,
                     a2_ref, dn2_ref, w2_ref, b2_ref,
                     o_ref, acc_ref, *,
                     matmul_dtype, project_first1, project_first2):
    """Two fused GraphConv(norm='both') + ReLU layers.

    Grid axis 0 tiles the layer-1 src-node (reduction) dimension.  The src
    normalizations are pre-folded into the adjacency columns, so the per-step
    body is pure MXU work.  acc_ref: f32 VMEM accumulator, shape
    (n1, f_hid) if project_first1 else (n1, f_in).
    """
    k = pl.program_id(0)
    nk = pl.num_programs(0)

    @pl.when(k == 0)
    def _init():
        acc_ref[...] = jnp.zeros_like(acc_ref)

    # ---- layer-1 partial aggregation over this src tile ----
    if project_first1:
        # (X_tile @ W1) first: narrower A1 matmul, smaller accumulator, and the
        # W1 projection overlaps streamed DMAs instead of sitting in the serial
        # last-step epilogue (associativity, exact up to f32 reassociation).
        proj = jnp.dot(x_ref[...], w1_ref[...],
                       preferred_element_type=jnp.float32)
        acc_ref[...] += jnp.dot(a1_ref[...], proj.astype(matmul_dtype),
                                preferred_element_type=jnp.float32)
    else:
        acc_ref[...] += jnp.dot(a1_ref[...], x_ref[...],
                                preferred_element_type=jnp.float32)

    # ---- finalize: layer-1 epilogue + full layer 2, only on last step ----
    @pl.when(k == nk - 1)
    def _finalize():
        if project_first1:
            h = acc_ref[...]                                         # f32
        else:
            h = jnp.dot(acc_ref[...].astype(matmul_dtype), w1_ref[...],
                        preferred_element_type=jnp.float32)
        h = jnp.maximum(h * dn1_ref[...] + b1_ref[...], 0.0)        # relu(conv1)

        hm = h.astype(matmul_dtype)
        if project_first2:
            proj2 = jnp.dot(hm, w2_ref[...],
                            preferred_element_type=jnp.float32)
            rst = jnp.dot(a2_ref[...], proj2.astype(matmul_dtype),
                          preferred_element_type=jnp.float32)
        else:
            agg2 = jnp.dot(a2_ref[...], hm,
                           preferred_element_type=jnp.float32)
            rst = jnp.dot(agg2.astype(matmul_dtype), w2_ref[...],
                          preferred_element_type=jnp.float32)
        o_ref[...] = jnp.maximum(rst * dn2_ref[...] + b2_ref[...], 0.0)  # relu(conv2)


# ------------------------------- wrapper -------------------------------------
def _round_up(v, m):
    return ((v + m - 1) // m) * m


def _pad_to(arr, shape):
    return jnp.pad(arr, [(0, t - s) for s, t in zip(arr.shape, shape)])


def _vmem_limit_bytes(frac=0.75):
    """Generation-aware scoped-VMEM budget (~96 MiB v5e/v6e, ~48 MiB v7x)."""
    try:
        cap = pltpu.get_tpu_info().vmem_capacity_bytes
    except Exception:
        cap = 64 * 1024 * 1024            # conservative (v7x per-core) fallback
    return max(32 * 1024 * 1024, min(int(cap * frac), 96 * 1024 * 1024))


def stochastic_two_layer_gcn(blocks, x, params, *,
                             matmul_dtype=jnp.bfloat16, src_tile=512):
    """Fused forward of StochasticTwoLayerGCN (both GraphConv layers + ReLUs).

    matmul_dtype=bfloat16 is the recommended production setting on all TPU
    generations (MXU-native, halves the streamed HBM bytes); accumulation and
    the elementwise epilogues stay f32.  Use float32 for bit-accurate checks.
    """
    (a1, so1, si1), (a2, so2, si2) = blocks
    w1, b1, w2, b2 = params

    n1, n0 = a1.shape
    n2 = a2.shape[0]
    f_in, f_hid = w1.shape
    f_out = w2.shape[1]

    # lane/sublane-aligned padded sizes (zero pads are exact no-ops on the math)
    f_in_p = _round_up(f_in, LANE)
    f_hid_p = _round_up(f_hid, LANE)
    f_out_p = _round_up(f_out, LANE)
    n1_p = _round_up(n1, SUBLANE)
    n2_p = _round_up(n2, SUBLANE)

    # Layer-1 src (reduction) tile: a multiple of the 128-lane width, with n0
    # zero-padded up to a tile multiple (no single-giant-block fallback).
    tk = _round_up(min(src_tile, _round_up(n0, LANE)), LANE)
    n0_p = _round_up(n0, tk)
    nk = n0_p // tk

    # Fold the 'both'-norm src scalings (out_deg^-1/2) into the adjacency
    # columns.  This fuses with the pad/cast pass the wrapper already does
    # (not a standalone prescale op) and removes all per-step VPU work.
    a1s = _pad_to(a1 * so1.reshape(1, n0), (n1_p, n0_p)).astype(matmul_dtype)
    a2s = _pad_to(a2 * so2.reshape(1, n1), (n2_p, n1_p)).astype(matmul_dtype)

    xp = _pad_to(x, (n0_p, f_in_p)).astype(matmul_dtype)
    w1p = _pad_to(w1, (f_in_p, f_hid_p)).astype(matmul_dtype)
    w2p = _pad_to(w2, (f_hid_p, f_out_p)).astype(matmul_dtype)
    b1p = _pad_to(b1.reshape(1, -1), (1, f_hid_p)).astype(jnp.float32)
    b2p = _pad_to(b2.reshape(1, -1), (1, f_out_p)).astype(jnp.float32)
    dn1 = _pad_to(si1, (n1_p, 1)).astype(jnp.float32)     # in_deg^-1/2, layer 1
    dn2 = _pad_to(si2, (n2_p, 1)).astype(jnp.float32)     # in_deg^-1/2, layer 2

    # Per-layer associativity: project before aggregating when it is cheaper
    # (and, for layer 1, when it shrinks the accumulator).
    project_first1 = f_hid_p <= f_in_p
    project_first2 = f_out_p <= f_hid_p
    acc_feats = f_hid_p if project_first1 else f_in_p

    kernel = functools.partial(fused_gcn_kernel,
                               matmul_dtype=matmul_dtype,
                               project_first1=project_first1,
                               project_first2=project_first2)

    if project_first1:
        l1_flops = 2 * (n0_p * f_in_p * f_hid_p + n1_p * n0_p * f_hid_p)
    else:
        l1_flops = 2 * (n1_p * n0_p * f_in_p + n1_p * f_in_p * f_hid_p)
    if project_first2:
        l2_flops = 2 * (n1_p * f_hid_p * f_out_p + n2_p * n1_p * f_out_p)
    else:
        l2_flops = 2 * (n2_p * n1_p * f_hid_p + n2_p * f_hid_p * f_out_p)
    flops = int(l1_flops + l2_flops)
    bytes_accessed = int(sum(v.size * v.dtype.itemsize for v in
                             (a1s, xp, dn1, w1p, b1p, a2s, dn2, w2p, b2p))
                         + n2_p * f_out_p * 4)

    const_idx = lambda k: (0, 0)    # resident blocks (norms, W, b, A2, output)

    def resident(shape):
        # Invariant operands: block index never changes, so the default second
        # pipeline buffer is dead VMEM -- single-buffer them.
        return pl.BlockSpec(shape, const_idx, pipeline_mode=pl.Buffered(1))

    out = pl.pallas_call(
        kernel,
        out_shape=jax.ShapeDtypeStruct((n2_p, f_out_p), jnp.float32),
        grid_spec=pltpu.PrefetchScalarGridSpec(
            num_scalar_prefetch=0,
            grid=(nk,),
            in_specs=[
                pl.BlockSpec((n1_p, tk), lambda k: (0, k)),      # A1 column tile
                pl.BlockSpec((tk, f_in_p), lambda k: (k, 0)),    # X row tile
                resident((n1_p, 1)),                             # dst norm, layer 1
                resident((f_in_p, f_hid_p)),                     # W1
                resident((1, f_hid_p)),                          # b1
                resident((n2_p, n1_p)),                          # A2 (resident at these sizes)
                resident((n2_p, 1)),                             # dst norm, layer 2
                resident((f_hid_p, f_out_p)),                    # W2
                resident((1, f_out_p)),                          # b2
            ],
            out_specs=pl.BlockSpec((n2_p, f_out_p), const_idx),
            scratch_shapes=[pltpu.VMEM((n1_p, acc_feats), jnp.float32)],
        ),
        compiler_params=pltpu.CompilerParams(
            dimension_semantics=("arbitrary",),   # src axis is a reduction
            vmem_limit_bytes=_vmem_limit_bytes(),
        ),
        cost_estimate=pl.CostEstimate(flops=flops, transcendentals=0,
                                      bytes_accessed=bytes_accessed),
    )(a1s, xp, dn1, w1p, b1p, a2s, dn2, w2p, b2p)

    return out[:n2, :f_out]


# ------------------------------ glue / params -------------------------------
def xavier_uniform(key, fan_in, fan_out):
    bound = (6.0 / (fan_in + fan_out)) ** 0.5
    return jax.random.uniform(key, (fan_in, fan_out), jnp.float32, -bound, bound)


def degree_norms(mask):
    """mask (Ndst, Nsrc) 0/1 -> (out_norm (Nsrc,1), in_norm (Ndst,1)), norm='both'."""
    out_deg = jnp.maximum(jnp.sum(mask, axis=0), 1.0)   # per-src, clamp(min=1)
    in_deg = jnp.maximum(jnp.sum(mask, axis=1), 1.0)    # per-dst, clamp(min=1)
    return (out_deg ** -0.5)[:, None], (in_deg ** -0.5)[:, None]


def make_block(key, n_dst, n_src, p_edge=0.4):
    k_mask, k_score = jax.random.split(key)
    mask = (jax.random.uniform(k_mask, (n_dst, n_src)) < p_edge).astype(jnp.float32)
    score = jax.random.uniform(k_score, (n_dst, n_src), jnp.float32)
    adj = mask * score                        # A[dst, src] = edge score
    out_norm, in_norm = degree_norms(mask)
    return adj, out_norm, in_norm


def reference(blocks, x, params):
    (a1, so1, si1), (a2, so2, si2) = blocks
    w1, b1, w2, b2 = params
    h = jnp.maximum((a1 @ (x * so1)) @ w1 * si1 + b1, 0.0)
    return jnp.maximum((a2 @ (h * so2)) @ w2 * si2 + b2, 0.0)


if __name__ == "__main__":
    key = jax.random.PRNGKey(0)
    in_features, hidden_features, out_features = 16, 32, 8
    n0, n1, n2 = 320, 64, 32   # src of block0, dst0 (=src of block1), dst1

    k_x, k_b0, k_b1, k_w1, k_w2 = jax.random.split(key, 5)

    x = jax.random.normal(k_x, (n0, in_features), jnp.float32)
    block0 = make_block(k_b0, n1, n0)
    block1 = make_block(k_b1, n2, n1)

    w1 = xavier_uniform(k_w1, in_features, hidden_features)
    b1 = jnp.zeros((hidden_features,), jnp.float32)    # nn.init.zeros_
    w2 = xavier_uniform(k_w2, hidden_features, out_features)
    b2 = jnp.zeros((out_features,), jnp.float32)
    params = (w1, b1, w2, b2)
    blocks = (block0, block1)

    ref = reference(blocks, x, params)

    # f32 MXU path, single reduction step (tk == padded n0): exact vs reference
    out = stochastic_two_layer_gcn(blocks, x, params, matmul_dtype=jnp.float32)
    out = jax.block_until_ready(out)
    assert out.shape == (n2, out_features)
    assert jnp.allclose(out, ref, atol=1e-4, rtol=1e-4)

    # f32 multi-step reduction grid (n0=320 zero-padded to 384, nk=3): exercises
    # the pl.when init/finalize and the padded-tail tile
    out_tiled = stochastic_two_layer_gcn(blocks, x, params,
                                         matmul_dtype=jnp.float32, src_tile=128)
    out_tiled = jax.block_until_ready(out_tiled)
    assert jnp.allclose(out_tiled, ref, atol=1e-4, rtol=1e-4)

    # bf16 streamed operands + f32 accumulation (recommended on v5e/v6e/v7x)
    out_bf16 = stochastic_two_layer_gcn(blocks, x, params)
    out_bf16 = jax.block_until_ready(out_bf16)
    assert out_bf16.shape == (n2, out_features)
    assert jnp.allclose(out_bf16, ref, atol=2e-2, rtol=5e-2)

    print("KERNEL_OK")
</pallas_src>

<mosaic_0001>
module attributes {stable_mosaic.version = 11 : i64} {
  func.func @fused_gcn_kernel(%arg0: i32, %arg1: memref<64x384xf32, #tpu.memory_space<vmem>>, %arg2: memref<384x128xf32, #tpu.memory_space<vmem>>, %arg3: memref<64x1xf32, #tpu.memory_space<vmem>>, %arg4: memref<128x128xf32, #tpu.memory_space<vmem>>, %arg5: memref<1x128xf32, #tpu.memory_space<vmem>>, %arg6: memref<32x64xf32, #tpu.memory_space<vmem>>, %arg7: memref<32x1xf32, #tpu.memory_space<vmem>>, %arg8: memref<128x128xf32, #tpu.memory_space<vmem>>, %arg9: memref<1x128xf32, #tpu.memory_space<vmem>>, %arg10: memref<32x128xf32, #tpu.memory_space<vmem>>, %arg11: memref<64x128xf32, #tpu.memory_space<vmem>>) attributes {dimension_semantics = [#tpu.dimension_semantics<arbitrary>], iteration_bounds = array<i64: 1>, scalar_prefetch = 0 : i64, scratch_operands = 1 : i64, tpu.core_type = #tpu.core_type<tc>, window_params = [{transform_indices = @transform_0, window_bounds = array<i64: 64, 384>}, {transform_indices = @transform_1, window_bounds = array<i64: 384, 128>}, {pipeline_mode = #tpu.pipeline_mode<synchronous>, transform_indices = @transform_2, window_bounds = array<i64: 64, 1>}, {pipeline_mode = #tpu.pipeline_mode<synchronous>, transform_indices = @transform_3, window_bounds = array<i64: 128, 128>}, {pipeline_mode = #tpu.pipeline_mode<synchronous>, transform_indices = @transform_4, window_bounds = array<i64: 1, 128>}, {pipeline_mode = #tpu.pipeline_mode<synchronous>, transform_indices = @transform_5, window_bounds = array<i64: 32, 64>}, {pipeline_mode = #tpu.pipeline_mode<synchronous>, transform_indices = @transform_6, window_bounds = array<i64: 32, 1>}, {pipeline_mode = #tpu.pipeline_mode<synchronous>, transform_indices = @transform_7, window_bounds = array<i64: 128, 128>}, {pipeline_mode = #tpu.pipeline_mode<synchronous>, transform_indices = @transform_8, window_bounds = array<i64: 1, 128>}, {pipeline_mode = #tpu.pipeline_mode<synchronous>, transform_indices = @transform_9, window_bounds = array<i64: 32, 128>}]} {
    %c0_i32 = arith.constant 0 : i32
    %0 = arith.cmpi eq, %arg0, %c0_i32 : i32
    %1 = arith.extui %0 : i1 to i32
    %c0_i32_0 = arith.constant 0 : i32
    %2 = arith.cmpi ne, %1, %c0_i32_0 : i32
    scf.if %2 {
      %cst_13 = arith.constant 0.000000e+00 : f32
      %14 = vector.broadcast %cst_13 : f32 to vector<64x128xf32>
      %c0_14 = arith.constant 0 : index
      %c0_15 = arith.constant 0 : index
      %15 = vector.load %arg11[%c0_14, %c0_15] : memref<64x128xf32, #tpu.memory_space<vmem>>, vector<64x128xf32>
      tpu.vector_store %arg11[%c0_14, %c0_15], %14 {strides = array<i32>} : memref<64x128xf32, #tpu.memory_space<vmem>>, vector<64x128xf32>,
    } else {
    }
    %c0 = arith.constant 0 : index
    %c0_1 = arith.constant 0 : index
    %3 = vector.load %arg2[%c0, %c0_1] : memref<384x128xf32, #tpu.memory_space<vmem>>, vector<384x128xf32>
    %c0_2 = arith.constant 0 : index
    %c0_3 = arith.constant 0 : index
    %4 = vector.load %arg4[%c0_2, %c0_3] : memref<128x128xf32, #tpu.memory_space<vmem>>, vector<128x128xf32>
    %cst = arith.constant dense<0.000000e+00> : vector<384x128xf32>
    %5 = tpu.matmul %3, %4, %cst {dimension_numbers = #tpu.dot_dimension_numbers<[1], [0], [0], [1], [0, 0, 1, 1], [], []>} : vector<384x128xf32>, vector<128x128xf32>, vector<384x128xf32> -> vector<384x128xf32>
    %c0_4 = arith.constant 0 : index
    %c0_5 = arith.constant 0 : index
    %6 = vector.load %arg11[%c0_4, %c0_5] : memref<64x128xf32, #tpu.memory_space<vmem>>, vector<64x128xf32>
    %c0_6 = arith.constant 0 : index
    %c0_7 = arith.constant 0 : index
    %7 = vector.load %arg1[%c0_6, %c0_7] : memref<64x384xf32, #tpu.memory_space<vmem>>, vector<64x384xf32>
    %cst_8 = arith.constant dense<0.000000e+00> : vector<64x128xf32>
    %8 = tpu.matmul %7, %5, %cst_8 {dimension_numbers = #tpu.dot_dimension_numbers<[1], [0], [0], [1], [0, 0, 1, 1], [], []>} : vector<64x384xf32>, vector<384x128xf32>, vector<64x128xf32> -> vector<64x128xf32>
    %9 = arith.addf %6, %8 : vector<64x128xf32>
    %c0_9 = arith.constant 0 : index
    %c0_10 = arith.constant 0 : index
    %10 = vector.load %arg11[%c0_9, %c0_10] : memref<64x128xf32, #tpu.memory_space<vmem>>, vector<64x128xf32>
    tpu.vector_store %arg11[%c0_9, %c0_10], %9 {strides = array<i32>} : memref<64x128xf32, #tpu.memory_space<vmem>>, vector<64x128xf32>,
    %c0_i32_11 = arith.constant 0 : i32
    %11 = arith.cmpi eq, %arg0, %c0_i32_11 : i32
    %12 = arith.extui %11 : i1 to i32
    %c0_i32_12 = arith.constant 0 : i32
    %13 = arith.cmpi ne, %12, %c0_i32_12 : i32
    scf.if %13 {
      %c0_13 = arith.constant 0 : index
      %c0_14 = arith.constant 0 : index
      %14 = vector.load %arg11[%c0_13, %c0_14] : memref<64x128xf32, #tpu.memory_space<vmem>>, vector<64x128xf32>
      %c0_15 = arith.constant 0 : index
      %c0_16 = arith.constant 0 : index
      %15 = vector.load %arg3[%c0_15, %c0_16] : memref<64x1xf32, #tpu.memory_space<vmem>>, vector<64x1xf32>
      %16 = vector.broadcast %15 : vector<64x1xf32> to vector<64x128xf32>
      %17 = arith.mulf %14, %16 : vector<64x128xf32>
      %c0_17 = arith.constant 0 : index
      %c0_18 = arith.constant 0 : index
      %18 = vector.load %arg5[%c0_17, %c0_18] : memref<1x128xf32, #tpu.memory_space<vmem>>, vector<1x128xf32>
      %19 = vector.broadcast %18 : vector<1x128xf32> to vector<64x128xf32>
      %20 = arith.addf %17, %19 : vector<64x128xf32>
      %cst_19 = arith.constant 0.000000e+00 : f32
      %21 = vector.broadcast %cst_19 : f32 to vector<64x128xf32>
      %22 = arith.maximumf %20, %21 : vector<64x128xf32>
      %c0_20 = arith.constant 0 : index
      %c0_21 = arith.constant 0 : index
      %23 = vector.load %arg8[%c0_20, %c0_21] : memref<128x128xf32, #tpu.memory_space<vmem>>, vector<128x128xf32>
      %cst_22 = arith.constant dense<0.000000e+00> : vector<64x128xf32>
      %24 = tpu.matmul %22, %23, %cst_22 {dimension_numbers = #tpu.dot_dimension_numbers<[1], [0], [0], [1], [0, 0, 1, 1], [], []>} : vector<64x128xf32>, vector<128x128xf32>, vector<64x128xf32> -> vector<64x128xf32>
      %c0_23 = arith.constant 0 : index
      %c0_24 = arith.constant 0 : index
      %25 = vector.load %arg6[%c0_23, %c0_24] : memref<32x64xf32, #tpu.memory_space<vmem>>, vector<32x64xf32>
      %cst_25 = arith.constant dense<0.000000e+00> : vector<32x128xf32>
      %26 = tpu.matmul %25, %24, %cst_25 {dimension_numbers = #tpu.dot_dimension_numbers<[1], [0], [0], [1], [0, 0, 1, 1], [], []>} : vector<32x64xf32>, vector<64x128xf32>, vector<32x128xf32> -> vector<32x128xf32>
      %c0_26 = arith.constant 0 : index
      %c0_27 = arith.constant 0 : index
      %27 = vector.load %arg7[%c0_26, %c0_27] : memref<32x1xf32, #tpu.memory_space<vmem>>, vector<32x1xf32>
      %28 = vector.broadcast %27 : vector<32x1xf32> to vector<32x128xf32>
      %29 = arith.mulf %26, %28 : vector<32x128xf32>
      %c0_28 = arith.constant 0 : index
      %c0_29 = arith.constant 0 : index
      %30 = vector.load %arg9[%c0_28, %c0_29] : memref<1x128xf32, #tpu.memory_space<vmem>>, vector<1x128xf32>
      %31 = vector.broadcast %30 : vector<1x128xf32> to vector<32x128xf32>
      %32 = arith.addf %29, %31 : vector<32x128xf32>
      %cst_30 = arith.constant 0.000000e+00 : f32
      %33 = vector.broadcast %cst_30 : f32 to vector<32x128xf32>
      %34 = arith.maximumf %32, %33 : vector<32x128xf32>
      %c0_31 = arith.constant 0 : index
      %c0_32 = arith.constant 0 : index
      %35 = vector.load %arg10[%c0_31, %c0_32] : memref<32x128xf32, #tpu.memory_space<vmem>>, vector<32x128xf32>
      tpu.vector_store %arg10[%c0_31, %c0_32], %34 {strides = array<i32>} : memref<32x128xf32, #tpu.memory_space<vmem>>, vector<32x128xf32>,
    } else {
    }
    return
  }
  func.func @transform_0(%arg0: i32) -> (i32, i32) {
    %c0_i32 = arith.constant 0 : i32
    %c0_i32_0 = arith.constant 0 : i32
    return %c0_i32, %arg0 : i32, i32
  }
  func.func @transform_1(%arg0: i32) -> (i32, i32) {
    %c0_i32 = arith.constant 0 : i32
    %c0_i32_0 = arith.constant 0 : i32
    return %arg0, %c0_i32 : i32, i32
  }
  func.func @transform_2(%arg0: i32) -> (i32, i32) {
    %c0_i32 = arith.constant 0 : i32
    %c0_i32_0 = arith.constant 0 : i32
    %c0_i32_1 = arith.constant 0 : i32
    return %c0_i32, %c0_i32_0 : i32, i32
  }
  func.func @transform_3(%arg0: i32) -> (i32, i32) {
    %c0_i32 = arith.constant 0 : i32
    %c0_i32_0 = arith.constant 0 : i32
    %c0_i32_1 = arith.constant 0 : i32
    return %c0_i32, %c0_i32_0 : i32, i32
  }
  func.func @transform_4(%arg0: i32) -> (i32, i32) {
    %c0_i32 = arith.constant 0 : i32
    %c0_i32_0 = arith.constant 0 : i32
    %c0_i32_1 = arith.constant 0 : i32
    return %c0_i32, %c0_i32_0 : i32, i32
  }
  func.func @transform_5(%arg0: i32) -> (i32, i32) {
    %c0_i32 = arith.constant 0 : i32
    %c0_i32_0 = arith.constant 0 : i32
    %c0_i32_1 = arith.constant 0 : i32
    return %c0_i32, %c0_i32_0 : i32, i32
  }
  func.func @transform_6(%arg0: i32) -> (i32, i32) {
    %c0_i32 = arith.constant 0 : i32
    %c0_i32_0 = arith.constant 0 : i32
    %c0_i32_1 = arith.constant 0 : i32
    return %c0_i32, %c0_i32_0 : i32, i32
  }
  func.func @transform_7(%arg0: i32) -> (i32, i32) {
    %c0_i32 = arith.constant 0 : i32
    %c0_i32_0 = arith.constant 0 : i32
    %c0_i32_1 = arith.constant 0 : i32
    return %c0_i32, %c0_i32_0 : i32, i32
  }
  func.func @transform_8(%arg0: i32) -> (i32, i32) {
    %c0_i32 = arith.constant 0 : i32
    %c0_i32_0 = arith.constant 0 : i32
    %c0_i32_1 = arith.constant 0 : i32
    return %c0_i32, %c0_i32_0 : i32, i32
  }
  func.func @transform_9(%arg0: i32) -> (i32, i32) {
    %c0_i32 = arith.constant 0 : i32
    %c0_i32_0 = arith.constant 0 : i32
    %c0_i32_1 = arith.constant 0 : i32
    return %c0_i32, %c0_i32_0 : i32, i32
  }
}

</mosaic_0001>

<bundles_post_ra>
// kernel: tpu_custom_call.1
= control target key start
LH: loop header
LB: loop body
LE: loop exit
PB: predicated region body
PF: predicated region fallthrough
CT: control target
= control target key end

     0   :  { %14 = vsyncpa [#allocation4], 0  ;;  %s1823_s0 = inlined_call_operand.hbm [shape: f32[64,384], index: 0, kind: input, shape index: {}]   ;;  %s1824_s1 = inlined_call_operand.hbm [shape: f32[384,128], index: 1, kind: input, shape index: {}]   ;;  %s1825_s2 = inlined_call_operand.vmem [shape: f32[64,1], index: 2, kind: input, shape index: {}]   ;;  %s1826_s3 = inlined_call_operand.hbm [shape: f32[128,128], index: 3, kind: input, shape index: {}]   ;;  %s1827_s4 = inlined_call_operand.vmem [shape: f32[1,128], index: 4, kind: input, shape index: {}]   ;;  %s1828_s5 = inlined_call_operand.vmem [shape: f32[32,64], index: 5, kind: input, shape index: {}]   ;;  %s1829_s6 = inlined_call_operand.vmem [shape: f32[32,1], index: 6, kind: input, shape index: {}]   ;;  %s1830_s7 = inlined_call_operand.hbm [shape: f32[128,128], index: 7, kind: input, shape index: {}]   ;;  %s1831_s8 = inlined_call_operand.vmem [shape: f32[1,128], index: 8, kind: input, shape index: {}]   ;;  %s1832_s9 = inlined_call_operand.hbm [shape: f32[32,128], index: 9, kind: output, shape index: {}]  }
   0x1   :  { %15 = vsyncpa [#allocation7], 0 }
   0x2   :  { %16 = vsyncpa [#allocation10], 0 }
   0x3   :  { %17 = vsyncpa [#allocation5], 0  ;;  %s1626_s30 = smov [#allocation6]  }
   0x4   :  { %s35_s10 = sshll.u32 %s1626_s30, 4  ;;  %s36_s10 = int_to_ptr.vmem [resolvable:$true] %s35_s10 }
   0x5   :  { %s1526_s11 = scalar_lea.vmem %s36_s10, 6144  ;;  %p1531_p1 = scmp.lt.s32.totalorder %s36_s10, %s36_s10 }
   0x6   :  { %p1527_p0 = scmp.ne.s32.totalorder %s36_s10, %s1526_s11  ;;  %p1532_p2 = scmp.lt.s32.totalorder %s1526_s11, %s1526_s11 }
   0x8   :  { %p1533_p3 = por %p1532_p2, %p1531_p1 }
   0xa   :  { %p1534_p4 = pnand %p1533_p3, %p1527_p0 }
   0xc   :  { %1537 = shalt.err (!%p1534_p4)
}
   0xd   :  { %s1627_s12 = smov 128   ;;  %s1628_s13 = smov 8  }
   0xe   :  { %41 = dma.hbm_to_vmem [thread:$0]  %s1824_s1, 6144, %s36_s10, [#allocation7], %s1627_s12, %s1627_s12, %s1628_s13  }
   0xf   :  { %s1629_s16 = smov [#allocation3]  }
  0x10   :  { %s23_s17 = sshll.u32 %s1629_s16, 4  ;;  %s24_s17 = int_to_ptr.vmem [resolvable:$true] %s23_s17 }
  0x11   :  { %s1546_s18 = scalar_lea.vmem %s24_s17, 3072  ;;  %p1551_p6 = scmp.lt.s32.totalorder %s24_s17, %s24_s17 }
  0x12   :  { %p1547_p5 = scmp.ne.s32.totalorder %s24_s17, %s1546_s18  ;;  %p1552_p7 = scmp.lt.s32.totalorder %s1546_s18, %s1546_s18 }
  0x14   :  { %p1553_p8 = por %p1552_p7, %p1551_p6 }
  0x16   :  { %p1554_p9 = pnand %p1553_p8, %p1547_p5 }
  0x18   :  { %1557 = shalt.err (!%p1554_p9)
}
  0x19   :  { %s1630_s19 = smov 384   ;;  %s1631_s20 = smov 24  }
  0x1a   :  { %29 = dma.hbm_to_vmem [thread:$0]  %s1823_s0, 3072, %s24_s17, [#allocation4], %s1630_s19, %s1630_s19, %s1631_s20  }
  0x1b   :  { %s1632_s23 = smov [#allocation8]   ;;  %s1633_s25 = smov [#allocation9]  }
  0x1c   :  { %s49_s24 = sshll.u32 %s1632_s23, 4  ;;  %s67_s1 = sshll.u32 %s1633_s25, 4  ;;  %s50_s24 = int_to_ptr.vmem [resolvable:$true] %s49_s24  ;;  %s68_s1 = int_to_ptr.vmem [resolvable:$true] %s67_s1 }
  0x1d   :  { %s1566_s26 = scalar_lea.vmem %s50_s24, 2048  ;;  %p1571_p11 = scmp.lt.s32.totalorder %s50_s24, %s50_s24 }
  0x1e   :  { %p1567_p10 = scmp.ne.s32.totalorder %s50_s24, %s1566_s26  ;;  %p1572_p12 = scmp.lt.s32.totalorder %s1566_s26, %s1566_s26 }
  0x20   :  { %p1573_p13 = por %p1572_p12, %p1571_p11 }
  0x22   :  { %p1574_p0 = pnand %p1573_p13, %p1567_p10 }
  0x24   :  { %1577 = shalt.err (!%p1574_p0)
}
  0x25   :  { %55 = dma.hbm_to_vmem [thread:$0]  %s1826_s3, 2048, %s50_s24, [#allocation7], %s1627_s12, %s1627_s12, %s1628_s13  }
  0x26   :  { %s1586_s0 = scalar_lea.vmem %s68_s1, 2048  ;;  %p1591_p2 = scmp.lt.s32.totalorder %s68_s1, %s68_s1 }
  0x27   :  { %p1587_p1 = scmp.ne.s32.totalorder %s68_s1, %s1586_s0  ;;  %p1592_p3 = scmp.lt.s32.totalorder %s1586_s0, %s1586_s0 }
  0x29   :  { %p1593_p4 = por %p1592_p3, %p1591_p2 }
  0x2b   :  { %p1594_p5 = pnand %p1593_p4, %p1587_p1 }
  0x2d   :  { %1597 = shalt.err (!%p1594_p5)
}
  0x2e   :  { %73 = dma.hbm_to_vmem [thread:$0]  %s1830_s7, 2048, %s68_s1, [#allocation10], %s1627_s12, %s1627_s12, %s1628_s13  }
  0x2f   :  { %1618 = dma.done.wait [#allocation4], 3072  }
  0x30   :  { %1619 = vsyncadd [#allocation4], 4294964224 }
  0x31   :  { %1620 = dma.done.wait [#allocation7], 8192  }
  0x32   :  { %1621 = vsyncadd [#allocation7], 4294959104 }
  0x33   :  { %1622 = dma.done.wait [#allocation10], 2048  }
  0x34   :  { %1623 = vsyncadd [#allocation10], 4294965248  ;;  %v163_v0 = vld [vmem:[#allocation8 + $0x78] sm:$0xff]  ;;  %v162_v1 = vld [vmem:[#allocation8 + $0x70] sm:$0xff]  ;;  %vm942_vm0 = vcmask 523264  }
  0x35   :  { %1292 = vmatprep.subr.mxu0 %v163_v0  ;;  %v161_v2 = vld [vmem:[#allocation8 + $0x68] sm:$0xff]  ;;  %v160_v3 = vld [vmem:[#allocation8 + $0x60] sm:$0xff]  ;;  %v159_v5 = vld [vmem:[#allocation8 + $0x58] sm:$0xff] }
  0x36   :  { %1293 = vmatpush3.msra.mxu0 %v163_v0  ;;  %v100_v4 = vld [vmem:[#allocation6] sm:$0xff]  ;;  %v158_v6 = vld [vmem:[#allocation8 + $0x50] sm:$0xff]  ;;  %v157_v7 = vld [vmem:[#allocation8 + $0x48] sm:$0xff] }
  0x37   :  { %1294 = vmatprep.subr.mxu0 %v162_v1  ;;  %1324 = vmatprep.mubr.f32.mxu0 %v100_v4  ;;  %v156_v8 = vld [vmem:[#allocation8 + $0x40] sm:$0xff]  ;;  %v155_v9 = vld [vmem:[#allocation8 + $0x38] sm:$0xff]  ;;  %v154_v10 = vld [vmem:[#allocation8 + $0x30] sm:$0xff] }
  0x38   :  { %1295 = vmatpush3.msra.mxu0 %v162_v1  ;;  %v153_v11 = vld [vmem:[#allocation8 + $0x28] sm:$0xff]  ;;  %v152_v12 = vld [vmem:[#allocation8 + $0x20] sm:$0xff]  ;;  %v151_v13 = vld [vmem:[#allocation8 + $0x18] sm:$0xff] }
  0x39   :  { %1296 = vmatprep.subr.mxu0 %v161_v2  ;;  %v150_v14 = vld [vmem:[#allocation8 + $0x10] sm:$0xff]  ;;  %v149_v15 = vld [vmem:[#allocation8 + $0x8] sm:$0xff]  ;;  %v148_v16 = vld [vmem:[#allocation8] sm:$0xff] }
  0x3a   :  { %1297 = vmatpush3.msra.mxu0 %v161_v2  ;;  %v101_v17 = vld [vmem:[#allocation6 + $0x8] sm:$0xff]  ;;  %v102_v18 = vld [vmem:[#allocation6 + $0x10] sm:$0xff]  ;;  %v103_v19 = vld [vmem:[#allocation6 + $0x18] sm:$0xff] }
  0x3b   :  { %1298 = vmatprep.subr.mxu0 %v160_v3  ;;  %v104_v20 = vld [vmem:[#allocation6 + $0x20] sm:$0xff]  ;;  %v105_v21 = vld [vmem:[#allocation6 + $0x28] sm:$0xff]  ;;  %v106_v22 = vld [vmem:[#allocation6 + $0x30] sm:$0xff] }
  0x3c   :  { %1299 = vmatpush3.msra.mxu0 %v160_v3  ;;  %v107_v23 = vld [vmem:[#allocation6 + $0x38] sm:$0xff]  ;;  %v108_v24 = vld [vmem:[#allocation6 + $0x40] sm:$0xff]  ;;  %v109_v25 = vld [vmem:[#allocation6 + $0x48] sm:$0xff] }
  0x3d   :  { %1300 = vmatprep.subr.mxu0 %v159_v5  ;;  %v110_v26 = vld [vmem:[#allocation6 + $0x50] sm:$0xff]  ;;  %v111_v27 = vld [vmem:[#allocation6 + $0x58] sm:$0xff]  ;;  %v112_v28 = vld [vmem:[#allocation6 + $0x60] sm:$0xff] }
  0x3e   :  { %1301 = vmatpush3.msra.mxu0 %v159_v5  ;;  %v113_v29 = vld [vmem:[#allocation6 + $0x68] sm:$0xff]  ;;  %v114_v30 = vld [vmem:[#allocation6 + $0x70] sm:$0xff]  ;;  %v115_v31 = vld [vmem:[#allocation6 + $0x78] sm:$0xff] }
  0x3f   :  { %1302 = vmatprep.subr.mxu0 %v158_v6  ;;  %v116_v32 = vld [vmem:[#allocation6 + $0x80] sm:$0xff]  ;;  %v117_v33 = vld [vmem:[#allocation6 + $0x88] sm:$0xff]  ;;  %v118_v34 = vld [vmem:[#allocation6 + $0x90] sm:$0xff] }
  0x40   :  { %1303 = vmatpush3.msra.mxu0 %v158_v6  ;;  %v119_v35 = vld [vmem:[#allocation6 + $0x98] sm:$0xff]  ;;  %v120_v36 = vld [vmem:[#allocation6 + $0xa0] sm:$0xff]  ;;  %v121_v37 = vld [vmem:[#allocation6 + $0xa8] sm:$0xff] }
  0x41   :  { %1304 = vmatprep.subr.mxu0 %v157_v7  ;;  %v122_v38 = vld [vmem:[#allocation6 + $0xb0] sm:$0xff]  ;;  %v123_v39 = vld [vmem:[#allocation6 + $0xb8] sm:$0xff]  ;;  %v124_v40 = vld [vmem:[#allocation6 + $0xc0] sm:$0xff] }
  0x42   :  { %1305 = vmatpush3.msra.mxu0 %v157_v7  ;;  %v125_v41 = vld [vmem:[#allocation6 + $0xc8] sm:$0xff]  ;;  %v126_v42 = vld [vmem:[#allocation6 + $0xd0] sm:$0xff]  ;;  %v127_v43 = vld [vmem:[#allocation6 + $0xd8] sm:$0xff] }
  0x43   :  { %1306 = vmatprep.subr.mxu0 %v156_v8  ;;  %v128_v44 = vld [vmem:[#allocation6 + $0xe0] sm:$0xff]  ;;  %v129_v45 = vld [vmem:[#allocation6 + $0xe8] sm:$0xff]  ;;  %v130_v46 = vld [vmem:[#allocation6 + $0xf0] sm:$0xff] }
  0x44   :  { %1307 = vmatpush3.msra.mxu0 %v156_v8  ;;  %v131_v47 = vld [vmem:[#allocation6 + $0xf8] sm:$0xff]  ;;  %v132_v48 = vld [vmem:[#allocation6 + $0x100] sm:$0xff]  ;;  %v133_v49 = vld [vmem:[#allocation6 + $0x108] sm:$0xff] }
  0x45   :  { %1308 = vmatprep.subr.mxu0 %v155_v9  ;;  %v134_v50 = vld [vmem:[#allocation6 + $0x110] sm:$0xff]  ;;  %v135_v51 = vld [vmem:[#allocation6 + $0x118] sm:$0xff]  ;;  %v136_v52 = vld [vmem:[#allocation6 + $0x120] sm:$0xff] }
  0x46   :  { %1309 = vmatpush3.msra.mxu0 %v155_v9  ;;  %v137_v53 = vld [vmem:[#allocation6 + $0x128] sm:$0xff]  ;;  %v138_v54 = vld [vmem:[#allocation6 + $0x130] sm:$0xff]  ;;  %v139_v55 = vld [vmem:[#allocation6 + $0x138] sm:$0xff]  ;;  %v1634_v9 = vmov 0  }
  0x47   :  { %1310 = vmatprep.subr.mxu0 %v154_v10  ;;  %v140_v56 = vld [vmem:[#allocation6 + $0x140] sm:$0xff]  ;;  %v141_v57 = vld [vmem:[#allocation6 + $0x148] sm:$0xff]  ;;  %v142_v58 = vld [vmem:[#allocation6 + $0x150] sm:$0xff]  ;;  %1516 = vset.pattern.permute.xlu0 %v1634_v9 }
  0x48   :  { %1311 = vmatpush3.msra.mxu0 %v154_v10  ;;  %v143_v59 = vld [vmem:[#allocation6 + $0x158] sm:$0xff]  ;;  %v144_v60 = vld [vmem:[#allocation6 + $0x160] sm:$0xff]  ;;  %v145_v61 = vld [vmem:[#allocation6 + $0x168] sm:$0xff]  ;;  %1517 = vset.pattern.permute.xlu1 %v1634_v9 }
  0x49   :  { %1312 = vmatprep.subr.mxu0 %v153_v11  ;;  %v146_v62 = vld [vmem:[#allocation6 + $0x170] sm:$0xff]  ;;  %v147_v63 = vld [vmem:[#allocation6 + $0x178] sm:$0xff]  ;;  %v478_v0 = vld [vmem:[#allocation3 + $0x8] sm:$0xff] }
  0x4a   :  { %1313 = vmatpush3.msra.mxu0 %v153_v11  ;;  %565 = vmatprep.mubr.f32.mxu1 %v478_v0  ;;  %v738_v6 = vld [vmem:[%s1825_s2] sm:$0xff]  ;;  %v740_v7 = vld [vmem:[%s1825_s2 + $0x10] sm:$0xff]  ;;  %v739_v11 = vld [vmem:[%s1825_s2 + $0x8] sm:$0xff] }
  0x4b   :  { %1314 = vmatprep.subr.mxu0 %v152_v12  ;;  %748 = vperm.xlu0 %1516, %v738_v6   ;;  %v480_v0 = vld [vmem:[#allocation3 + $0x18] sm:$0xff]  ;;  %v489_v6 = vld [vmem:[#allocation3 + $0x60] sm:$0xff] }
  0x4c   :  { %1315 = vmatpush3.msra.mxu0 %v152_v12  ;;  %758 = vperm.xlu1 %1517, %v740_v7   ;;  %v741_v12 = vld [vmem:[%s1825_s2 + $0x18] sm:$0xff]  ;;  %v493_v7 = vld [vmem:[#allocation3 + $0x80] sm:$0xff] }
  0x4d   :  { %1316 = vmatprep.subr.mxu0 %v151_v13  ;;  %v496_v9 = vld [vmem:[#allocation3 + $0x98] sm:$0xff] }
  0x4e   :  { %1317 = vmatpush3.msra.mxu0 %v151_v13 }
  0x4f   :  { %1318 = vmatprep.subr.mxu0 %v150_v14  ;;  %753 = vperm.xlu0 %1516, %v739_v11   ;;  %v499_v11 = vld [vmem:[#allocation3 + $0xb0] sm:$0xff] }
  0x50   :  { %1319 = vmatpush3.msra.mxu0 %v150_v14  ;;  %763 = vperm.xlu1 %1517, %v741_v12   ;;  %v498_v12 = vld [vmem:[#allocation3 + $0xa8] sm:$0xff] }
  0x51   :  { %1320 = vmatprep.subr.mxu0 %v149_v15 }
  0x52   :  { %1321 = vmatpush3.msra.mxu0 %v149_v15  ;;  %v742_v15 = vld [vmem:[%s1825_s2 + $0x20] sm:$0xff] }
  0x53   :  { %1322 = vmatprep.subr.mxu0 %v148_v16  ;;  %768 = vperm.xlu0 %1516, %v742_v15   ;;  %v485_v15 = vld [vmem:[#allocation3 + $0x40] sm:$0xff] }
  0x54   :  { %1323 = vmatpush3.msra.mxu0 %v148_v16  ;;  %v743_v16 = vld [vmem:[%s1825_s2 + $0x28] sm:$0xff] }
  0x55   :  { %1325 = vmatmul.mubr.f32.vlgmr.msra.gmra.mxu0 %v101_v17  ;;  %773 = vperm.xlu1 %1517, %v743_v16   ;;  %v488_v16 = vld [vmem:[#allocation3 + $0x58] sm:$0xff] }
  0x56   :  { %1327 = vmatprep.mubr.f32.mxu0 %v102_v18 }
  0x59   :  { %1328 = vmatmul.mubr.f32.gmra.mxu0 %v103_v19  ;;  %v744_v19 = vld [vmem:[%s1825_s2 + $0x30] sm:$0xff] }
  0x5a   :  { %1330 = vmatprep.mubr.f32.mxu0 %v104_v20  ;;  %v745_v20 = vld [vmem:[%s1825_s2 + $0x38] sm:$0xff]  ;;  %778 = vperm.xlu0 %1516, %v744_v19   ;;  %v497_v19 = vld [vmem:[#allocation3 + $0xa0] sm:$0xff] }
  0x5b   :  { %783 = vperm.xlu1 %1517, %v745_v20   ;;  %v500_v20 = vld [vmem:[#allocation3 + $0xb8] sm:$0xff] }
  0x5d   :  { %1331 = vmatmul.mubr.f32.gmra.mxu0 %v105_v21 }
  0x5e   :  { %1333 = vmatprep.mubr.f32.mxu0 %v106_v22 }
  0x61   :  { %1334 = vmatmul.mubr.f32.gmra.mxu0 %v107_v23  ;;  %v1040_v23 = vld [vmem:[%s1829_s6] sm:$0xff] }
  0x62   :  { %1336 = vmatprep.mubr.f32.mxu0 %v108_v24  ;;  %v1041_v24 = vld [vmem:[%s1829_s6 + $0x8] sm:$0xff]  ;;  %1046 = vperm.xlu0 %1516, %v1040_v23  }
  0x63   :  { %1051 = vperm.xlu1 %1517, %v1041_v24   ;;  %v830_v23 = vld [vmem:[#allocation9 + $0x68] sm:$0xff]  ;;  %v829_v24 = vld [vmem:[#allocation9 + $0x60] sm:$0xff] }
  0x65   :  { %1337 = vmatmul.mubr.f32.gmra.mxu0 %v109_v25 }
  0x66   :  { %1339 = vmatprep.mubr.f32.mxu0 %v110_v26 }
  0x69   :  { %1340 = vmatmul.mubr.f32.gmra.mxu0 %v111_v27  ;;  %v1042_v27 = vld [vmem:[%s1829_s6 + $0x10] sm:$0xff] }
  0x6a   :  { %1342 = vmatprep.mubr.f32.mxu0 %v112_v28  ;;  %v1043_v28 = vld [vmem:[%s1829_s6 + $0x18] sm:$0xff]  ;;  %1056 = vperm.xlu0 %1516, %v1042_v27   ;;  %v826_v27 = vld [vmem:[#allocation9 + $0x48] sm:$0xff] }
  0x6b   :  { %1061 = vperm.xlu1 %1517, %v1043_v28   ;;  %v825_v28 = vld [vmem:[#allocation9 + $0x40] sm:$0xff] }
  0x6d   :  { %1343 = vmatmul.mubr.f32.gmra.mxu0 %v113_v29 }
  0x6e   :  { %1345 = vmatprep.mubr.f32.mxu0 %v114_v30 }
  0x71   :  { %1346 = vmatmul.mubr.f32.gmra.mxu0 %v115_v31 }
  0x72   :  { %1348 = vmatprep.mubr.f32.mxu0 %v116_v32 }
  0x75   :  { %1349 = vmatmul.mubr.f32.gmra.mxu0 %v117_v33 }
  0x76   :  { %1351 = vmatprep.mubr.f32.mxu0 %v118_v34 }
  0x79   :  { %1352 = vmatmul.mubr.f32.gmra.mxu0 %v119_v35 }
  0x7a   :  { %1354 = vmatprep.mubr.f32.mxu0 %v120_v36 }
  0x7d   :  { %1355 = vmatmul.mubr.f32.gmra.mxu0 %v121_v37 }
  0x7e   :  { %1357 = vmatprep.mubr.f32.mxu0 %v122_v38 }
  0x81   :  { %1358 = vmatmul.mubr.f32.gmra.mxu0 %v123_v39 }
  0x82   :  { %1360 = vmatprep.mubr.f32.mxu0 %v124_v40 }
  0x85   :  { %1361 = vmatmul.mubr.f32.gmra.mxu0 %v125_v41 }
  0x86   :  { %1363 = vmatprep.mubr.f32.mxu0 %v126_v42 }
  0x89   :  { %1364 = vmatmul.mubr.f32.gmra.mxu0 %v127_v43 }
  0x8a   :  { %1366 = vmatprep.mubr.f32.mxu0 %v128_v44 }
  0x8d   :  { %1367 = vmatmul.mubr.f32.gmra.mxu0 %v129_v45 }
  0x8e   :  { %1369 = vmatprep.mubr.f32.mxu0 %v130_v46 }
  0x91   :  { %1370 = vmatmul.mubr.f32.gmra.mxu0 %v131_v47 }
  0x92   :  { %1372 = vmatprep.mubr.f32.mxu0 %v132_v48 }
  0x95   :  { %1373 = vmatmul.mubr.f32.gmra.mxu0 %v133_v49 }
  0x96   :  { %1375 = vmatprep.mubr.f32.mxu0 %v134_v50 }
  0x99   :  { %1376 = vmatmul.mubr.f32.gmra.mxu0 %v135_v51 }
  0x9a   :  { %1378 = vmatprep.mubr.f32.mxu0 %v136_v52 }
  0x9d   :  { %1379 = vmatmul.mubr.f32.gmra.mxu0 %v137_v53 }
  0x9e   :  { %1381 = vmatprep.mubr.f32.mxu0 %v138_v54 }
  0xa1   :  { %1382 = vmatmul.mubr.f32.gmra.mxu0 %v139_v55 }
  0xa2   :  { %1384 = vmatprep.mubr.f32.mxu0 %v140_v56 }
  0xa5   :  { %1385 = vmatmul.mubr.f32.gmra.mxu0 %v141_v57 }
  0xa6   :  { %1387 = vmatprep.mubr.f32.mxu0 %v142_v58 }
  0xa9   :  { %1388 = vmatmul.mubr.f32.gmra.mxu0 %v143_v59 }
  0xaa   :  { %1390 = vmatprep.mubr.f32.mxu0 %v144_v60  ;;  %v477_v60 = vld [vmem:[#allocation3] sm:$0xff] }
  0xad   :  { %1391 = vmatmul.mubr.f32.gmra.mxu0 %v145_v61  ;;  %v481_v61 = vld [vmem:[#allocation3 + $0x20] sm:$0xff] }
  0xae   :  { %1393 = vmatprep.mubr.f32.mxu0 %v146_v62 }
  0xb1   :  { %1394 = vmatmul.mubr.f32.gmra.mxu0 %v147_v63 }
 0x115   :  { %v1707_v1 = vpop.f32.mrf.mxu0 }
 0x117   :  { %v1709_v2 = vpop.f32.mrf.mxu0 }
 0x119   :  { %v1711_v3 = vpop.f32.mrf.mxu0 }
 0x11b   :  { %v1713_v4 = vpop.f32.mrf.mxu0 }
 0x11d   :  { %v1715_v5 = vpop.f32.mrf.mxu0 }
 0x11f   :  { %v1723_v8 = vpop.f32.mrf.mxu0 }
 0x121   :  { %v1725_v10 = vpop.f32.mrf.mxu0 }
 0x123   :  { %v1733_v13 = vpop.f32.mrf.mxu0 }
 0x125   :  { %v1338_v14 = vpop.f32.mrf.mxu0 }
 0x127   :  { %v270_v17 = vpop.f32.mrf.mxu0 }
 0x129   :  { %v1341_v18 = vpop.f32.mrf.mxu0 }
 0x12b   :  { %v280_v21 = vpop.f32.mrf.mxu0 }
 0x12d   :  { %v1344_v22 = vpop.f32.mrf.mxu0 }
 0x12f   :  { %v290_v25 = vpop.f32.mrf.mxu0 }
 0x131   :  { %v1347_v26 = vpop.f32.mrf.mxu0 }
 0x133   :  { %v300_v29 = vpop.f32.mrf.mxu0 }
 0x135   :  { %v1350_v30 = vpop.f32.mrf.mxu0 }
 0x137   :  { %v310_v31 = vpop.f32.mrf.mxu0 }
 0x139   :  { %v1353_v32 = vpop.f32.mrf.mxu0 }
 0x13b   :  { %v320_v33 = vpop.f32.mrf.mxu0 }
 0x13d   :  { %v1356_v34 = vpop.f32.mrf.mxu0 }
 0x13f   :  { %v330_v35 = vpop.f32.mrf.mxu0 }
 0x141   :  { %v1359_v36 = vpop.f32.mrf.mxu0 }
 0x143   :  { %v340_v37 = vpop.f32.mrf.mxu0 }
 0x145   :  { %v1362_v38 = vpop.f32.mrf.mxu0 }
 0x147   :  { %v350_v39 = vpop.f32.mrf.mxu0 }
 0x149   :  { %v1365_v40 = vpop.f32.mrf.mxu0 }
 0x14b   :  { %v360_v41 = vpop.f32.mrf.mxu0 }
 0x14d   :  { %v1368_v42 = vpop.f32.mrf.mxu0 }
 0x14f   :  { %v370_v43 = vpop.f32.mrf.mxu0 }
 0x151   :  { %v1371_v44 = vpop.f32.mrf.mxu0 }
 0x152   :  { %1176 = vmatprep.subr.mxu1 %v1371_v44 }
 0x153   :  { %v380_v45 = vpop.f32.mrf.mxu0  ;;  %1177 = vmatpush3.msra.mxu1 %v1347_v26  ;;  %v827_v26 = vld [vmem:[#allocation9 + $0x50] sm:$0xff] }
 0x154   :  { %1178 = vmatprep.subr.mxu1 %v380_v45 }
 0x155   :  { %v1759_v46 = vpop.f32.mrf.mxu0  ;;  %1179 = vmatpush3.msra.mxu1 %v300_v29  ;;  %v824_v29 = vld [vmem:[#allocation9 + $0x38] sm:$0xff] }
 0x156   :  { %1180 = vmatprep.subr.mxu1 %v1368_v42 }
 0x157   :  { %v1761_v47 = vpop.f32.mrf.mxu0  ;;  %1181 = vmatpush3.msra.mxu1 %v1344_v22  ;;  %v831_v22 = vld [vmem:[#allocation9 + $0x70] sm:$0xff] }
 0x158   :  { %1182 = vmatprep.subr.mxu1 %v370_v43 }
 0x159   :  { %v1763_v48 = vpop.f32.mrf.mxu0  ;;  %1183 = vmatpush3.msra.mxu1 %v290_v25  ;;  %v828_v25 = vld [vmem:[#allocation9 + $0x58] sm:$0xff] }
 0x15a   :  { %1184 = vmatprep.subr.mxu1 %v1365_v40 }
 0x15b   :  { %v1765_v49 = vpop.f32.mrf.mxu0  ;;  %1185 = vmatpush3.msra.mxu1 %v1341_v18  ;;  %v494_v18 = vld [vmem:[#allocation3 + $0x88] sm:$0xff] }
 0x15c   :  { %1186 = vmatprep.subr.mxu1 %v360_v41 }
 0x15d   :  { %v1767_v50 = vpop.f32.mrf.mxu0  ;;  %1187 = vmatpush3.msra.mxu1 %v280_v21  ;;  %v832_v21 = vld [vmem:[#allocation9 + $0x78] sm:$0xff] }
 0x15e   :  { %1188 = vmatprep.subr.mxu1 %v1362_v38 }
 0x15f   :  { %v1769_v51 = vpop.f32.mrf.mxu0  ;;  %1189 = vmatpush3.msra.mxu1 %v1338_v14  ;;  %v482_v14 = vld [vmem:[#allocation3 + $0x28] sm:$0xff] }
 0x160   :  { %1190 = vmatprep.subr.mxu1 %v350_v39 }
 0x161   :  { %v1383_v52 = vpop.f32.mrf.mxu0  ;;  %1191 = vmatpush3.msra.mxu1 %v270_v17  ;;  %v491_v17 = vld [vmem:[#allocation3 + $0x70] sm:$0xff] }
 0x162   :  { %1192 = vmatprep.subr.mxu1 %v1359_v36  ;;  %v817_v36 = vld [vmem:[#allocation9] sm:$0xff] }
 0x163   :  { %v1771_v53 = vpop.f32.mrf.mxu0  ;;  %1193 = vmatpush3.msra.mxu1 %v1725_v10  ;;  %v495_v10 = vld [vmem:[#allocation3 + $0x90] sm:$0xff] }
 0x164   :  { %1194 = vmatprep.subr.mxu1 %v340_v37 }
 0x165   :  { %v1386_v54 = vpop.f32.mrf.mxu0  ;;  %1195 = vmatpush3.msra.mxu1 %v1733_v13  ;;  %v479_v13 = vld [vmem:[#allocation3 + $0x10] sm:$0xff] }
 0x166   :  { %1196 = vmatprep.subr.mxu1 %v1356_v34  ;;  %v819_v34 = vld [vmem:[#allocation9 + $0x10] sm:$0xff] }
 0x167   :  { %v430_v55 = vpop.f32.mrf.mxu0  ;;  %1197 = vmatpush3.msra.mxu1 %v1715_v5  ;;  %v490_v5 = vld [vmem:[#allocation3 + $0x68] sm:$0xff] }
 0x168   :  { %1198 = vmatprep.subr.mxu1 %v330_v35  ;;  %v818_v35 = vld [vmem:[#allocation9 + $0x8] sm:$0xff] }
 0x169   :  { %v1389_v56 = vpop.f32.mrf.mxu0  ;;  %1199 = vmatpush3.msra.mxu1 %v1723_v8  ;;  %v492_v8 = vld [vmem:[#allocation3 + $0x78] sm:$0xff] }
 0x16a   :  { %1200 = vmatprep.subr.mxu1 %v1353_v32  ;;  %v821_v32 = vld [vmem:[#allocation9 + $0x20] sm:$0xff] }
 0x16b   :  { %v440_v57 = vpop.f32.mrf.mxu0  ;;  %1201 = vmatpush3.msra.mxu1 %v1711_v3  ;;  %v484_v3 = vld [vmem:[#allocation3 + $0x38] sm:$0xff] }
 0x16c   :  { %1202 = vmatprep.subr.mxu1 %v320_v33  ;;  %v820_v33 = vld [vmem:[#allocation9 + $0x18] sm:$0xff] }
 0x16d   :  { %v1392_v58 = vpop.f32.mrf.mxu0  ;;  %1203 = vmatpush3.msra.mxu1 %v1713_v4  ;;  %v487_v4 = vld [vmem:[#allocation3 + $0x50] sm:$0xff] }
 0x16e   :  { %1204 = vmatprep.subr.mxu1 %v1350_v30  ;;  %v823_v30 = vld [vmem:[#allocation9 + $0x30] sm:$0xff] }
 0x16f   :  { %v450_v59 = vpop.f32.mrf.mxu0  ;;  %1205 = vmatpush3.msra.mxu1 %v1707_v1  ;;  %v483_v1 = vld [vmem:[#allocation3 + $0x30] sm:$0xff] }
 0x170   :  { %1206 = vmatprep.subr.mxu1 %v310_v31  ;;  %v822_v31 = vld [vmem:[#allocation9 + $0x28] sm:$0xff] }
 0x171   :  { %v1395_v62 = vpop.f32.mrf.mxu0  ;;  %1207 = vmatpush3.msra.mxu1 %v1709_v2  ;;  %v486_v2 = vld [vmem:[#allocation3 + $0x48] sm:$0xff] }
 0x172   :  { %566 = vmatmul.mubr.f32.vlgmr.msra.gmra.mxu1 %v477_v60  ;;  %1396 = vmatprep.subr.mxu1 %v1395_v62 }
 0x173   :  { %v460_v63 = vpop.f32.mrf.mxu0  ;;  %1397 = vmatpush3.msra.mxu1 %v1395_v62  ;;  %570 = vmatprep.mubr.f32.mxu1 %v481_v61 }
 0x174   :  { %1398 = vmatprep.subr.mxu1 %v460_v63 }
 0x175   :  { %1399 = vmatpush3.msra.mxu1 %v460_v63 }
 0x176   :  { %571 = vmatmul.mubr.f32.gmra.mxu1 %v480_v0  ;;  %1400 = vmatprep.subr.mxu1 %v1392_v58  ;;  %v1106_v0 = vld [vmem:[%s1827_s4] ss:$0 sm:$0xff] }
 0x177   :  { %1401 = vmatpush3.msra.mxu1 %v1392_v58  ;;  %575 = vmatprep.mubr.f32.mxu1 %v484_v3 }
 0x178   :  { %1402 = vmatprep.subr.mxu1 %v450_v59 }
 0x179   :  { %1403 = vmatpush3.msra.mxu1 %v450_v59 }
 0x17a   :  { %576 = vmatmul.mubr.f32.gmra.mxu1 %v483_v1  ;;  %1404 = vmatprep.subr.mxu1 %v1389_v56 }
 0x17b   :  { %1405 = vmatpush3.msra.mxu1 %v1389_v56  ;;  %580 = vmatprep.mubr.f32.mxu1 %v487_v4 }
 0x17c   :  { %1406 = vmatprep.subr.mxu1 %v440_v57 }
 0x17d   :  { %1407 = vmatpush3.msra.mxu1 %v440_v57 }
 0x17e   :  { %581 = vmatmul.mubr.f32.gmra.mxu1 %v486_v2  ;;  %1408 = vmatprep.subr.mxu1 %v1386_v54 }
 0x17f   :  { %1409 = vmatpush3.msra.mxu1 %v1386_v54  ;;  %585 = vmatprep.mubr.f32.mxu1 %v490_v5 }
 0x180   :  { %1410 = vmatprep.subr.mxu1 %v430_v55 }
 0x181   :  { %1411 = vmatpush3.msra.mxu1 %v430_v55 }
 0x182   :  { %586 = vmatmul.mubr.f32.gmra.mxu1 %v489_v6  ;;  %1412 = vmatprep.subr.mxu1 %v1383_v52 }
 0x183   :  { %1413 = vmatpush3.msra.mxu1 %v1383_v52  ;;  %590 = vmatprep.mubr.f32.mxu1 %v493_v7  ;;  %v759_v52 = vpop.permute.xlu1 %758 }
 0x184   :  { %1414 = vmatprep.subr.mxu1 %v1771_v53 }
 0x185   :  { %1415 = vmatpush3.msra.mxu1 %v1771_v53 }
 0x186   :  { %591 = vmatmul.mubr.f32.gmra.mxu1 %v492_v8  ;;  %1416 = vmatprep.subr.mxu1 %v1767_v50 }
 0x187   :  { %1417 = vmatpush3.msra.mxu1 %v1767_v50  ;;  %595 = vmatprep.mubr.f32.mxu1 %v496_v9  ;;  %v764_v60 = vpop.permute.xlu1 %763 }
 0x188   :  { %1418 = vmatprep.subr.mxu1 %v1769_v51 }
 0x189   :  { %1419 = vmatpush3.msra.mxu1 %v1769_v51  ;;  %v749_v51 = vpop.permute.xlu0 %748 }
 0x18a   :  { %596 = vmatmul.mubr.f32.gmra.mxu1 %v495_v10  ;;  %1420 = vmatprep.subr.mxu1 %v1763_v48 }
 0x18b   :  { %1421 = vmatpush3.msra.mxu1 %v1763_v48  ;;  %600 = vmatprep.mubr.f32.mxu1 %v499_v11 }
 0x18c   :  { %1422 = vmatprep.subr.mxu1 %v1765_v49 }
 0x18d   :  { %1423 = vmatpush3.msra.mxu1 %v1765_v49  ;;  %v754_v58 = vpop.permute.xlu0 %753 }
 0x18e   :  { %601 = vmatmul.mubr.f32.gmra.mxu1 %v498_v12  ;;  %1424 = vmatprep.subr.mxu1 %v1759_v46  ;;  %v774_v12 = vpop.permute.xlu1 %773 }
 0x18f   :  { %1425 = vmatpush3.msra.mxu1 %v1759_v46  ;;  %1428 = vmatprep.mubr.f32.mxu1 %v479_v13 }
 0x190   :  { %1426 = vmatprep.subr.mxu1 %v1761_v47 }
 0x191   :  { %1427 = vmatpush3.msra.mxu1 %v1761_v47 }
 0x192   :  { %1429 = vmatmul.mubr.f32.vlgmr.msra.gmra.mxu1 %v482_v14  ;;  %1440 = vmatprep.subr.mxu1 %v832_v21 }
 0x193   :  { %1431 = vmatprep.mubr.f32.mxu1 %v485_v15  ;;  %1441 = vmatpush3.msra.mxu1 %v832_v21 }
 0x194   :  { %1442 = vmatprep.subr.mxu1 %v831_v22 }
 0x195   :  { %1443 = vmatpush3.msra.mxu1 %v831_v22 }
 0x196   :  { %1432 = vmatmul.mubr.f32.gmra.mxu1 %v488_v16  ;;  %1444 = vmatprep.subr.mxu1 %v830_v23 }
 0x197   :  { %1434 = vmatprep.mubr.f32.mxu1 %v491_v17  ;;  %1445 = vmatpush3.msra.mxu1 %v830_v23 }
 0x198   :  { %1446 = vmatprep.subr.mxu1 %v829_v24 }
 0x199   :  { %1447 = vmatpush3.msra.mxu1 %v829_v24 }
 0x19a   :  { %1435 = vmatmul.mubr.f32.gmra.mxu1 %v494_v18  ;;  %1448 = vmatprep.subr.mxu1 %v828_v25  ;;  %v769_v18 = vpop.permute.xlu0 %768 }
 0x19b   :  { %1437 = vmatprep.mubr.f32.mxu1 %v497_v19  ;;  %1449 = vmatpush3.msra.mxu1 %v828_v25 }
 0x19c   :  { %1450 = vmatprep.subr.mxu1 %v827_v26 }
 0x19d   :  { %1451 = vmatpush3.msra.mxu1 %v827_v26 }
 0x19e   :  { %1438 = vmatmul.mubr.f32.gmra.mxu1 %v500_v20  ;;  %1452 = vmatprep.subr.mxu1 %v826_v27 }
 0x19f   :  { %1453 = vmatpush3.msra.mxu1 %v826_v27 }
 0x1a0   :  { %1454 = vmatprep.subr.mxu1 %v825_v28 }
 0x1a1   :  { %1455 = vmatpush3.msra.mxu1 %v825_v28 }
 0x1a2   :  { %1456 = vmatprep.subr.mxu1 %v824_v29 }
 0x1a3   :  { %1457 = vmatpush3.msra.mxu1 %v824_v29 }
 0x1a4   :  { %1458 = vmatprep.subr.mxu1 %v823_v30 }
 0x1a5   :  { %1459 = vmatpush3.msra.mxu1 %v823_v30 }
 0x1a6   :  { %1460 = vmatprep.subr.mxu1 %v822_v31 }
 0x1a7   :  { %1461 = vmatpush3.msra.mxu1 %v822_v31  ;;  %v784_v31 = vpop.permute.xlu1 %783 }
 0x1a8   :  { %1462 = vmatprep.subr.mxu1 %v821_v32 }
 0x1a9   :  { %1463 = vmatpush3.msra.mxu1 %v821_v32 }
 0x1aa   :  { %1464 = vmatprep.subr.mxu1 %v820_v33 }
 0x1ab   :  { %1465 = vmatpush3.msra.mxu1 %v820_v33 }
 0x1ac   :  { %1466 = vmatprep.subr.mxu1 %v819_v34 }
 0x1ad   :  { %1467 = vmatpush3.msra.mxu1 %v819_v34 }
 0x1ae   :  { %1468 = vmatprep.subr.mxu1 %v818_v35 }
 0x1af   :  { %1469 = vmatpush3.msra.mxu1 %v818_v35 }
 0x1b0   :  { %1470 = vmatprep.subr.mxu1 %v817_v36 }
 0x1b1   :  { %1471 = vmatpush3.msra.mxu1 %v817_v36 }
 0x232   :  { %v1208_v37 = vpop.f32.mrf.mxu1 }
 0x234   :  { %v1209_v38 = vpop.f32.mrf.mxu1 }
 0x235   :  { %v1210_v57 = vadd.f32 %v1209_v38, %v1208_v37  ;;  %v779_v38 = vpop.permute.xlu0 %778 }
 0x236   :  { %v1211_v39 = vpop.f32.mrf.mxu1 }
 0x238   :  { %v1212_v40 = vpop.f32.mrf.mxu1 }
 0x239   :  { %v1213_v55 = vadd.f32 %v1212_v40, %v1211_v39 }
 0x23a   :  { %v1214_v41 = vpop.f32.mrf.mxu1 }
 0x23c   :  { %v1215_v42 = vpop.f32.mrf.mxu1 }
 0x23d   :  { %v1216_v4 = vadd.f32 %v1215_v42, %v1214_v41 }
 0x23e   :  { %v1217_v43 = vpop.f32.mrf.mxu1 }
 0x240   :  { %v1218_v44 = vpop.f32.mrf.mxu1 }
 0x241   :  { %v1219_v62 = vadd.f32 %v1218_v44, %v1217_v43 }
 0x242   :  { %v1220_v45 = vpop.f32.mrf.mxu1 }
 0x244   :  { %v1221_v46 = vpop.f32.mrf.mxu1 }
 0x245   :  { %v1222_v14 = vadd.f32 %v1221_v46, %v1220_v45  ;;  %v938_v46 = vld [vmem:[%s1828_s5] sm:$0xff] }
 0x246   :  { %v1223_v47 = vpop.f32.mrf.mxu1 }
 0x248   :  { %v1224_v48 = vpop.f32.mrf.mxu1 }
 0x249   :  { %v1225_v8 = vadd.f32 %v1224_v48, %v1223_v47 }
 0x24a   :  { %v1226_v49 = vpop.f32.mrf.mxu1 }
 0x24c   :  { %v1227_v50 = vpop.f32.mrf.mxu1 }
 0x24d   :  { %v1228_v27 = vadd.f32 %v1227_v50, %v1226_v49 }
 0x24e   :  { %v1229_v53 = vpop.f32.mrf.mxu1 }
 0x250   :  { %v1230_v54 = vpop.f32.mrf.mxu1 }
 0x251   :  { %v1231_v22 = vadd.f32 %v1230_v54, %v1229_v53 }
 0x252   :  { %v1430_v56 = vpop.f32.mrf.mxu1 }
 0x253   :  { %v678_v59 = vadd.f32 %v1430_v56, %v1213_v55  ;;  %v939_v55 = vld [vmem:[%s1828_s5 + $0x8] sm:$0xff]  ;;  %v940_v56 = vld [vmem:[%s1828_s5 + $0x10] sm:$0xff] }
 0x254   :  { %v672_v61 = vpop.f32.mrf.mxu1 }
 0x255   :  { %v787_v63 = vmul.f32 %v754_v58, %v678_v59  ;;  %v673_v3 = vadd.f32 %v1210_v57, %v672_v61  ;;  %v941_v57 = vld [vmem:[%s1828_s5 + $0x18] sm:$0xff]  ;;  %v1052_v58 = vpop.permute.xlu1 %1051  ;;  %v1047_v59 = vpop.permute.xlu0 %1046  ;;  %v1111_v61 = vld [vmem:[%s1831_s8] ss:$0 sm:$0xff]  ;;  %s1635_s5 = smov [#allocation11]  }
 0x256   :  { %v1433_v1 = vpop.f32.mrf.mxu1  ;;  %s1092_s20 = sshll.u32 %s1635_s5, 4  ;;  %s1093_s20 = int_to_ptr.vmem [resolvable:$true] %s1092_s20 }
 0x257   :  { %v786_v2 = vmul.f32 %v749_v51, %v673_v3  ;;  %v688_v5 = vadd.f32 %v1433_v1, %v1219_v62  ;;  %v802_v6 = vadd.f32 %v1106_v0, %v787_v63  ;;  %s1598_s8 = scalar_lea.vmem %s1093_s20, 512  ;;  %p1603_p7 = scmp.lt.s32.totalorder %s1093_s20, %s1093_s20 }
 0x258   :  { %v682_v7 = vpop.f32.mrf.mxu1  ;;  %p1599_p6 = scmp.ne.s32.totalorder %s1093_s20, %s1598_s8  ;;  %p1604_p8 = scmp.lt.s32.totalorder %s1598_s8, %s1598_s8 }
 0x259   :  { %v789_v9 = vmul.f32 %v764_v60, %v688_v5  ;;  %v683_v10 = vadd.f32 %v1216_v4, %v682_v7  ;;  %v801_v11 = vadd.f32 %v1106_v0, %v786_v2  ;;  %v810_v19 = vmax.f32 %v802_v6, 0.0  ;;  %v1062_v1 = vpop.permute.xlu1 %1061  ;;  %v1057_v7 = vpop.permute.xlu0 %1056 }
 0x25a   :  { %v1436_v13 = vpop.f32.mrf.mxu1  ;;  %p1605_p9 = por %p1604_p8, %p1603_p7 }
 0x25b   :  { %v788_v15 = vmul.f32 %v759_v52, %v683_v10  ;;  %v698_v16 = vadd.f32 %v1436_v13, %v1225_v8  ;;  %v809_v17 = vmax.f32 %v801_v11, 0.0  ;;  %v804_v21 = vadd.f32 %v1106_v0, %v789_v9 }
 0x25c   :  { %v692_v20 = vpop.f32.mrf.mxu1  ;;  %p1606_p10 = pnand %p1605_p9, %p1599_p6 }
 0x25d   :  { %v791_v23 = vmul.f32 %v774_v12, %v698_v16  ;;  %v693_v24 = vadd.f32 %v1222_v14, %v692_v20  ;;  %1472 = vmatprep.mubr.f32.mxu1 %v809_v17  ;;  %v803_v25 = vadd.f32 %v1106_v0, %v788_v15  ;;  %v812_v33 = vmax.f32 %v804_v21, 0.0 }
 0x25e   :  { %v1439_v26 = vpop.f32.mrf.mxu1  ;;  %1473 = vmatmul.mubr.f32.vlgmr.msra.gmra.mxu1 %v810_v19 }
 0x25f   :  { %v790_v28 = vmul.f32 %v769_v18, %v693_v24  ;;  %v708_v29 = vadd.f32 %v1439_v26, %v1231_v22  ;;  %v811_v30 = vmax.f32 %v803_v25, 0.0  ;;  %v806_v34 = vadd.f32 %v1106_v0, %v791_v23 }
 0x260   :  { %v702_v32 = vpop.f32.mrf.mxu1 }
 0x261   :  { %v793_v35 = vmul.f32 %v784_v31, %v708_v29  ;;  %v703_v36 = vadd.f32 %v1228_v27, %v702_v32  ;;  %1475 = vmatprep.mubr.f32.mxu1 %v811_v30  ;;  %v805_v37 = vadd.f32 %v1106_v0, %v790_v28  ;;  %v814_v41 = vmax.f32 %v806_v34, 0.0 }
 0x262   :  { %1476 = vmatmul.mubr.f32.gmra.mxu1 %v812_v33 }
 0x263   :  { %v792_v39 = vmul.f32 %v779_v38, %v703_v36  ;;  %v813_v40 = vmax.f32 %v805_v37, 0.0  ;;  %v808_v42 = vadd.f32 %v1106_v0, %v793_v35 }
 0x265   :  { %1478 = vmatprep.mubr.f32.mxu1 %v813_v40  ;;  %v807_v43 = vadd.f32 %v1106_v0, %v792_v39  ;;  %v816_v45 = vmax.f32 %v808_v42, 0.0 }
 0x266   :  { %1479 = vmatmul.mubr.f32.gmra.mxu1 %v814_v41 }
 0x267   :  { %v815_v44 = vmax.f32 %v807_v43, 0.0 }
 0x269   :  { %1481 = vmatprep.mubr.f32.mxu1 %v815_v44 }
 0x26a   :  { %1482 = vmatmul.mubr.f32.gmra.mxu1 %v816_v45 }
 0x26b   :  { %1500 = vmatprep.mubr.msk.f32.mxu1 %vm942_vm0, %v938_v46 }
 0x31e   :  { %v1474_v47 = vpop.f32.mrf.mxu1 }
 0x320   :  { %v899_v48 = vpop.f32.mrf.mxu1 }
 0x322   :  { %v1477_v49 = vpop.f32.mrf.mxu1 }
 0x324   :  { %v909_v50 = vpop.f32.mrf.mxu1 }
 0x326   :  { %v1480_v51 = vpop.f32.mrf.mxu1 }
 0x328   :  { %v919_v52 = vpop.f32.mrf.mxu1 }
 0x32a   :  { %v1483_v53 = vpop.f32.mrf.mxu1 }
 0x32b   :  { %1484 = vmatprep.subr.mxu1 %v1483_v53 }
 0x32c   :  { %v929_v54 = vpop.f32.mrf.mxu1  ;;  %1485 = vmatpush3.msra.mxu1 %v1483_v53 }
 0x32d   :  { %1486 = vmatprep.subr.mxu1 %v929_v54 }
 0x32e   :  { %1487 = vmatpush3.msra.mxu1 %v929_v54 }
 0x32f   :  { %1488 = vmatprep.subr.mxu1 %v1480_v51 }
 0x330   :  { %1489 = vmatpush3.msra.mxu1 %v1480_v51 }
 0x331   :  { %1490 = vmatprep.subr.mxu1 %v919_v52 }
 0x332   :  { %1491 = vmatpush3.msra.mxu1 %v919_v52 }
 0x333   :  { %1492 = vmatprep.subr.mxu1 %v1477_v49 }
 0x334   :  { %1493 = vmatpush3.msra.mxu1 %v1477_v49 }
 0x335   :  { %1494 = vmatprep.subr.mxu1 %v909_v50 }
 0x336   :  { %1495 = vmatpush3.msra.mxu1 %v909_v50 }
 0x337   :  { %1496 = vmatprep.subr.mxu1 %v1474_v47 }
 0x338   :  { %1497 = vmatpush3.msra.mxu1 %v1474_v47 }
 0x339   :  { %1498 = vmatprep.subr.mxu1 %v899_v48 }
 0x33a   :  { %1499 = vmatpush3.msra.mxu1 %v899_v48 }
 0x33b   :  { %1501 = vmatmul.mubr.msk.f32.vlgmr.msra.gmra.mxu1 %vm942_vm0, %v939_v55 }
 0x33c   :  { %1503 = vmatprep.mubr.msk.f32.mxu1 %vm942_vm0, %v940_v56 }
 0x33f   :  { %1504 = vmatmul.mubr.msk.f32.gmra.mxu1 %vm942_vm0, %v941_v57 }
 0x3fb   :  { %v1502_v60 = vpop.f32.mrf.mxu1 }
 0x3fc   :  { %v1065_v62 = vmul.f32 %v1502_v60, %v1052_v58 }
 0x3fd   :  { %v1021_v63 = vpop.f32.mrf.mxu1 }
 0x3fe   :  { %v1076_v0 = vadd.f32 %v1111_v61, %v1065_v62  ;;  %v1064_v3 = vmul.f32 %v1047_v59, %v1021_v63 }
 0x3ff   :  { %v1505_v4 = vpop.f32.mrf.mxu1 }
 0x400   :  { %v1080_v2 = vmax.f32 %v1076_v0, 0.0  ;;  %v1075_v5 = vadd.f32 %v1111_v61, %v1064_v3  ;;  %v1067_v6 = vmul.f32 %v1505_v4, %v1062_v1 }
 0x401   :  { %v1031_v8 = vpop.f32.mrf.mxu1 }
 0x402   :  { %1084 = vst [vmem:[#allocation11 + $0x8] sm:$0xff] %v1080_v2  ;;  %v1079_v9 = vmax.f32 %v1075_v5, 0.0  ;;  %v1078_v10 = vadd.f32 %v1111_v61, %v1067_v6  ;;  %v1066_v11 = vmul.f32 %v1057_v7, %v1031_v8 }
 0x404   :  { %1083 = vst [vmem:[#allocation11] sm:$0xff] %v1079_v9  ;;  %v1082_v12 = vmax.f32 %v1078_v10, 0.0  ;;  %v1077_v13 = vadd.f32 %v1111_v61, %v1066_v11 }
 0x406   :  { %1086 = vst [vmem:[#allocation11 + $0x18] sm:$0xff] %v1082_v12  ;;  %v1081_v14 = vmax.f32 %v1077_v13, 0.0 }
 0x408   :  { %1085 = vst [vmem:[#allocation11 + $0x10] sm:$0xff] %v1081_v14 }
 0x409   :  { %1609 = shalt.err (!%p1606_p10)
}
 0x40a   :  { %1098 = dma.vmem_to_hbm [thread:$0]  %s1093_s20, 512, %s1832_s9, [#allocation5], %s1627_s12, %s1627_s12, %s1628_s13  }
 0x40b   :  { %1624 = dma.done.wait [#allocation5], 512  }
 0x40c   :  { %1625 = vsyncadd [#allocation5], 4294966784 }
 0x40d   :  { %1102 = vsyncpa [#allocation4], 1 }
 0x40e   :  { %1103 = vsyncpa [#allocation7], 1 }
 0x40f   :  { %1104 = vsyncpa [#allocation10], 1 }
 0x410   :  { %1105 = vsyncpa [#allocation5], 1 }

</bundles_post_ra>
